<compile_context>
chip_gen: v5e
topology: v5e:2x2
jax: 0.10.0
libtpu: 0.0.40
codegen_flags: <defaults>
</compile_context>

<pallas_src>
import functools

import jax
import jax.numpy as jnp
from jax.experimental import pallas as pl
from jax.experimental.pallas import tpu as pltpu


def _round_up(x, m):
    return ((x + m - 1) // m) * m


# --------------------------------------------------------------------------- #
# Phase 1: pipelined global-average-pool reduction + 1x1 conv + BN + ReLU
# --------------------------------------------------------------------------- #
def _reduce_kernel(x_ref, w_ref, scale_ref, shift_ref, o_ref, acc_ref, *,
                   hw, tile_hw, ragged, inv_hw):
    # x_ref:     [B, C_in, tile_hw]   one spatial tile (last tile may be ragged)
    # w_ref:     [C_in, C_out]        1x1 conv weight (transposed, native dtype)
    # scale_ref: [1, C_out] f32       folded BN scale
    # shift_ref: [1, C_out] f32       folded BN shift
    # o_ref:     [B, C_out] f32       pooled + conv + BN + ReLU result
    # acc_ref:   [B, C_in, 128] f32   lane-shaped partial-sum accumulator
    t = pl.program_id(0)
    nt = pl.num_programs(0)

    @pl.when(t == 0)
    def _init():
        acc_ref[...] = jnp.zeros_like(acc_ref)

    def _accumulate(valid):
        # Static, lane-aligned 128-wide column slices: pure VPU adds, no
        # per-step cross-lane reduce and no relayout.  `valid` is static.
        acc = acc_ref[...]
        for i in range(tile_hw // 128):
            lo = i * 128
            if lo >= valid:
                break
            chunk = x_ref[:, :, lo:lo + 128].astype(jnp.float32)
            if lo + 128 <= valid:
                acc = acc + chunk
            else:
                lane = jax.lax.broadcasted_iota(jnp.int32, (1, 1, 128), 2)
                acc = acc + jnp.where(lane < (valid - lo), chunk, 0.0)
        acc_ref[...] = acc

    if ragged:
        rem = hw % tile_hw  # static > 0

        @pl.when(t < nt - 1)
        def _full_tiles():
            _accumulate(tile_hw)

        @pl.when(t == nt - 1)
        def _last_tile():
            _accumulate(rem)
    else:
        _accumulate(tile_hw)

    @pl.when(t == nt - 1)
    def _finalize():
        # Single deferred cross-lane reduce + relayout on the tiny accumulator.
        pooled = jnp.sum(acc_ref[...], axis=-1) * inv_hw            # [B, C_in]
        w = w_ref[...].astype(jnp.float32)                          # [C_in, C_out]
        y = jnp.dot(pooled, w, preferred_element_type=jnp.float32)  # [B, C_out]
        y = y * scale_ref[...] + shift_ref[...]                     # folded BN
        o_ref[...] = jnp.maximum(y, 0.0).astype(o_ref.dtype)        # ReLU


# --------------------------------------------------------------------------- #
# Phase 2: lane-dense broadcast (expand) of the [B, C_out] vector over space
# --------------------------------------------------------------------------- #
def _broadcast_kernel(y_ref, o_ref):
    # y_ref: [B, C_out] f32 ; o_ref: [B, C_out, tile_hw_expand]
    y = y_ref[...].astype(o_ref.dtype)
    o_ref[...] = jnp.broadcast_to(y[:, :, None], o_ref.shape)


def psp4_pooling(x, conv_w, gamma, beta, running_mean, running_var, eps=1e-5,
                 *, tile_hw=None, tile_hw_expand=None):
    """x: [B, C_in, H, W] (NCHW).  conv_w: [C_out, C_in, 1, 1]."""
    B, C_in, H, W = x.shape
    C_out = conv_w.shape[0]
    HW = H * W

    x_itemsize = jnp.dtype(x.dtype).itemsize
    out_itemsize = x_itemsize
    w_itemsize = jnp.dtype(conv_w.dtype).itemsize

    # ---- generation-aware VMEM budget -------------------------------------- #
    try:
        vmem_cap = int(pltpu.get_tpu_info().vmem_capacity_bytes)
    except Exception:
        vmem_cap = 64 * 1024 * 1024
    if vmem_cap <= 0:
        vmem_cap = 64 * 1024 * 1024
    vmem_limit = int(min(vmem_cap * 3 // 4, 100 * 1024 * 1024))

    hw_tiles_full = _round_up(HW, 128)

    # ---- phase-1 tile selection (lane-dense, multiple of 128) --------------- #
    # Resident/constant footprint: double-buffered w + scale/shift, the lane
    # accumulator and the tiny output.
    const_bytes = (2 * (C_in * C_out * w_itemsize + 2 * C_out * 4)
                   + B * C_in * 128 * 4 + 2 * B * C_out * 4)
    budget1 = max(1 << 20, vmem_limit - const_bytes - (4 << 20))
    if tile_hw is None:
        t1 = budget1 // max(1, 2 * B * C_in * x_itemsize)   # double-buffered x
        t1 = (t1 // 128) * 128
        # >= ~2 KiB contiguous bytes per (b, c) row per DMA.
        min_run = _round_up(max(1, 2048 // x_itemsize), 128)
        t1 = max(min_run, t1)
        t1 = min(t1, 8192)                                   # bound per-step unroll
        tile_hw = max(128, min(t1, hw_tiles_full))
    else:
        tile_hw = max(128, (int(tile_hw) // 128) * 128)
        tile_hw = min(tile_hw, hw_tiles_full)
    num_tiles = (HW + tile_hw - 1) // tile_hw
    ragged = (HW % tile_hw) != 0

    # ---- host-side prep (all metadata-only: no extra HBM passes) ------------ #
    x_flat = x.reshape(B, C_in, HW)                              # free reshape
    w = conv_w.reshape(C_out, C_in).T                            # [C_in, C_out], native dtype
    inv_std = 1.0 / jnp.sqrt(running_var.astype(jnp.float32) + eps)
    scale = (gamma.astype(jnp.float32) * inv_std).reshape(1, C_out)
    shift = (beta.astype(jnp.float32)
             - running_mean.astype(jnp.float32)
             * gamma.astype(jnp.float32) * inv_std).reshape(1, C_out)

    # ---- phase 1: pipelined reduction --------------------------------------- #
    flops1 = 2 * B * C_in * HW + 2 * B * C_in * C_out
    bytes1 = (B * C_in * HW * x_itemsize + C_in * C_out * w_itemsize
              + 2 * C_out * 4 + B * C_out * 4)
    pooled = pl.pallas_call(
        functools.partial(_reduce_kernel, hw=HW, tile_hw=tile_hw,
                          ragged=ragged, inv_hw=1.0 / float(HW)),
        out_shape=jax.ShapeDtypeStruct((B, C_out), jnp.float32),
        grid=(num_tiles,),
        in_specs=[
            pl.BlockSpec((B, C_in, tile_hw), lambda t: (0, 0, t)),
            pl.BlockSpec((C_in, C_out), lambda t: (0, 0)),
            pl.BlockSpec((1, C_out), lambda t: (0, 0)),
            pl.BlockSpec((1, C_out), lambda t: (0, 0)),
        ],
        out_specs=pl.BlockSpec((B, C_out), lambda t: (0, 0)),
        scratch_shapes=[pltpu.VMEM((B, C_in, 128), jnp.float32)],
        compiler_params=pltpu.CompilerParams(
            dimension_semantics=("arbitrary",),      # HW is the reduction axis
            vmem_limit_bytes=vmem_limit,
        ),
        cost_estimate=pl.CostEstimate(flops=flops1, transcendentals=0,
                                      bytes_accessed=bytes1),
    )(x_flat, w, scale, shift)

    # ---- phase-2 tile selection (decoupled, much wider) --------------------- #
    if tile_hw_expand is None:
        budget2 = max(1 << 20, vmem_limit - (2 << 20))
        t2 = budget2 // max(1, 2 * B * C_out * out_itemsize)  # double-buffered out
        t2 = (t2 // 128) * 128
        t2 = min(max(t2, 512), 32768)
        tile_hw_expand = max(128, min(t2, hw_tiles_full))
    else:
        tile_hw_expand = max(128, (int(tile_hw_expand) // 128) * 128)
        tile_hw_expand = min(tile_hw_expand, hw_tiles_full)
    num_tiles2 = (HW + tile_hw_expand - 1) // tile_hw_expand

    # ---- phase 2: lane-dense expand over space (ragged store handled by
    #      Pallas: OOB part of the last block's writeback is dropped) --------- #
    bytes2 = B * C_out * HW * out_itemsize + B * C_out * 4
    out_flat = pl.pallas_call(
        _broadcast_kernel,
        out_shape=jax.ShapeDtypeStruct((B, C_out, HW), x.dtype),
        grid=(num_tiles2,),
        in_specs=[pl.BlockSpec((B, C_out), lambda t: (0, 0))],
        out_specs=pl.BlockSpec((B, C_out, tile_hw_expand), lambda t: (0, 0, t)),
        compiler_params=pltpu.CompilerParams(
            dimension_semantics=("parallel",),       # independent output tiles
            vmem_limit_bytes=vmem_limit,
        ),
        cost_estimate=pl.CostEstimate(flops=B * C_out * HW, transcendentals=0,
                                      bytes_accessed=bytes2),
    )(pooled)

    return out_flat.reshape(B, C_out, H, W)          # free reshape (minor split)


def _reference(x, conv_w, gamma, beta, running_mean, running_var, eps=1e-5):
    """Pure-JAX reference of the same forward (computed in f32)."""
    B, C_in, H, W = x.shape
    C_out = conv_w.shape[0]
    x32 = x.astype(jnp.float32)
    pooled = jnp.mean(x32, axis=(2, 3))                              # [B, C_in]
    y = pooled @ conv_w.reshape(C_out, C_in).T.astype(jnp.float32)   # [B, C_out]
    y = (y - running_mean) / jnp.sqrt(running_var + eps) * gamma + beta
    y = jnp.maximum(y, 0.0)
    return jnp.broadcast_to(y[:, :, None, None], (B, C_out, H, W))


if __name__ == "__main__":
    key = jax.random.PRNGKey(0)

    def run_case(idx, B, C_in, C_out, H, W, dtype,
                 tile_hw=None, tile_hw_expand=None, atol=1e-5, rtol=1e-5):
        ks = jax.random.split(jax.random.fold_in(key, idx), 6)
        x = jax.random.normal(ks[0], (B, C_in, H, W), dtype=jnp.float32).astype(dtype)
        conv_w = 0.1 * jax.random.normal(ks[1], (C_out, C_in, 1, 1), dtype=jnp.float32)
        gamma = 1.0 + 0.1 * jax.random.normal(ks[2], (C_out,), dtype=jnp.float32)
        beta = 0.1 * jax.random.normal(ks[3], (C_out,), dtype=jnp.float32)
        mean = 0.05 * jax.random.normal(ks[4], (C_out,), dtype=jnp.float32)
        var = jnp.abs(jax.random.normal(ks[5], (C_out,), dtype=jnp.float32)) + 0.5

        out = psp4_pooling(x, conv_w, gamma, beta, mean, var,
                           tile_hw=tile_hw, tile_hw_expand=tile_hw_expand)
        out = jax.block_until_ready(out)
        ref = _reference(x, conv_w, gamma, beta, mean, var)
        assert out.shape == (B, C_out, H, W), (idx, out.shape)
        assert jnp.allclose(out.astype(jnp.float32), ref, atol=atol, rtol=rtol), \
            f"mismatch vs reference in case {idx}"

    # Base case (HW divides evenly, single tile).
    run_case(0, 2, 4, 8, 16, 16, jnp.float32)
    # Ragged, multi-tile case exercising the in-kernel mask and the ragged
    # phase-2 store (forced small tiles).
    run_case(1, 2, 4, 8, 16, 25, jnp.float32, tile_hw=256, tile_hw_expand=128)
    # bf16 inputs (f32 accumulation, bf16 expanded output).
    run_case(2, 2, 16, 8, 16, 16, jnp.bfloat16, atol=2e-2, rtol=2e-2)

    print("KERNEL_OK")
</pallas_src>

<mosaic_0001>
module attributes {stable_mosaic.version = 11 : i64} {
  func.func @_reduce_kernel(%arg0: i32, %arg1: memref<2x4x256xf32, #tpu.memory_space<vmem>>, %arg2: memref<4x8xf32, #tpu.memory_space<vmem>>, %arg3: memref<1x8xf32, #tpu.memory_space<vmem>>, %arg4: memref<1x8xf32, #tpu.memory_space<vmem>>, %arg5: memref<2x8xf32, #tpu.memory_space<vmem>>, %arg6: memref<2x4x128xf32, #tpu.memory_space<vmem>>) attributes {dimension_semantics = [#tpu.dimension_semantics<arbitrary>], iteration_bounds = array<i64: 1>, scalar_prefetch = 0 : i64, scratch_operands = 1 : i64, tpu.core_type = #tpu.core_type<tc>, window_params = [{transform_indices = @transform_0, window_bounds = array<i64: 2, 4, 256>}, {pipeline_mode = #tpu.pipeline_mode<synchronous>, transform_indices = @transform_1, window_bounds = array<i64: 4, 8>}, {pipeline_mode = #tpu.pipeline_mode<synchronous>, transform_indices = @transform_2, window_bounds = array<i64: 1, 8>}, {pipeline_mode = #tpu.pipeline_mode<synchronous>, transform_indices = @transform_3, window_bounds = array<i64: 1, 8>}, {pipeline_mode = #tpu.pipeline_mode<synchronous>, transform_indices = @transform_4, window_bounds = array<i64: 2, 8>}]} {
    %c0_i32 = arith.constant 0 : i32
    %0 = arith.cmpi eq, %arg0, %c0_i32 : i32
    %1 = arith.extui %0 : i1 to i32
    %c0_i32_0 = arith.constant 0 : i32
    %2 = arith.cmpi ne, %1, %c0_i32_0 : i32
    scf.if %2 {
      %cst = arith.constant 0.000000e+00 : f32
      %12 = vector.broadcast %cst : f32 to vector<2x4x128xf32>
      %c0_13 = arith.constant 0 : index
      %c0_14 = arith.constant 0 : index
      %c0_15 = arith.constant 0 : index
      %13 = vector.load %arg6[%c0_13, %c0_14, %c0_15] : memref<2x4x128xf32, #tpu.memory_space<vmem>>, vector<2x4x128xf32>
      tpu.vector_store %arg6[%c0_13, %c0_14, %c0_15], %12 {strides = array<i32>} : memref<2x4x128xf32, #tpu.memory_space<vmem>>, vector<2x4x128xf32>,
    } else {
    }
    %c0 = arith.constant 0 : index
    %c0_1 = arith.constant 0 : index
    %c0_2 = arith.constant 0 : index
    %3 = vector.load %arg6[%c0, %c0_1, %c0_2] : memref<2x4x128xf32, #tpu.memory_space<vmem>>, vector<2x4x128xf32>
    %c0_3 = arith.constant 0 : index
    %c0_4 = arith.constant 0 : index
    %c0_5 = arith.constant 0 : index
    %4 = vector.load %arg1[%c0_3, %c0_4, %c0_5] : memref<2x4x256xf32, #tpu.memory_space<vmem>>, vector<2x4x128xf32>
    %5 = arith.addf %3, %4 : vector<2x4x128xf32>
    %c0_6 = arith.constant 0 : index
    %c0_7 = arith.constant 0 : index
    %c128 = arith.constant 128 : index
    %6 = vector.load %arg1[%c0_6, %c0_7, %c128] : memref<2x4x256xf32, #tpu.memory_space<vmem>>, vector<2x4x128xf32>
    %7 = arith.addf %5, %6 : vector<2x4x128xf32>
    %c0_8 = arith.constant 0 : index
    %c0_9 = arith.constant 0 : index
    %c0_10 = arith.constant 0 : index
    %8 = vector.load %arg6[%c0_8, %c0_9, %c0_10] : memref<2x4x128xf32, #tpu.memory_space<vmem>>, vector<2x4x128xf32>
    tpu.vector_store %arg6[%c0_8, %c0_9, %c0_10], %7 {strides = array<i32>} : memref<2x4x128xf32, #tpu.memory_space<vmem>>, vector<2x4x128xf32>,
    %c0_i32_11 = arith.constant 0 : i32
    %9 = arith.cmpi eq, %arg0, %c0_i32_11 : i32
    %10 = arith.extui %9 : i1 to i32
    %c0_i32_12 = arith.constant 0 : i32
    %11 = arith.cmpi ne, %10, %c0_i32_12 : i32
    scf.if %11 {
      %c0_13 = arith.constant 0 : index
      %c0_14 = arith.constant 0 : index
      %c0_15 = arith.constant 0 : index
      %12 = vector.load %arg6[%c0_13, %c0_14, %c0_15] : memref<2x4x128xf32, #tpu.memory_space<vmem>>, vector<2x4x128xf32>
      %cst = arith.constant dense<0.000000e+00> : vector<2x4xf32>
      %13 = vector.multi_reduction <add>, %12, %cst [2] : vector<2x4x128xf32> to vector<2x4xf32>
      %cst_16 = arith.constant 3.906250e-03 : f32
      %14 = vector.broadcast %cst_16 : f32 to vector<2x4xf32>
      %15 = arith.mulf %13, %14 : vector<2x4xf32>
      %c0_17 = arith.constant 0 : index
      %c0_18 = arith.constant 0 : index
      %16 = vector.load %arg2[%c0_17, %c0_18] : memref<4x8xf32, #tpu.memory_space<vmem>>, vector<4x8xf32>
      %cst_19 = arith.constant dense<0.000000e+00> : vector<2x8xf32>
      %17 = tpu.matmul %15, %16, %cst_19 {dimension_numbers = #tpu.dot_dimension_numbers<[1], [0], [0], [1], [0, 0, 1, 1], [], []>} : vector<2x4xf32>, vector<4x8xf32>, vector<2x8xf32> -> vector<2x8xf32>
      %c0_20 = arith.constant 0 : index
      %c0_21 = arith.constant 0 : index
      %18 = vector.load %arg3[%c0_20, %c0_21] : memref<1x8xf32, #tpu.memory_space<vmem>>, vector<1x8xf32>
      %19 = vector.broadcast %18 : vector<1x8xf32> to vector<2x8xf32>
      %20 = arith.mulf %17, %19 : vector<2x8xf32>
      %c0_22 = arith.constant 0 : index
      %c0_23 = arith.constant 0 : index
      %21 = vector.load %arg4[%c0_22, %c0_23] : memref<1x8xf32, #tpu.memory_space<vmem>>, vector<1x8xf32>
      %22 = vector.broadcast %21 : vector<1x8xf32> to vector<2x8xf32>
      %23 = arith.addf %20, %22 : vector<2x8xf32>
      %cst_24 = arith.constant 0.000000e+00 : f32
      %24 = vector.broadcast %cst_24 : f32 to vector<2x8xf32>
      %25 = arith.maximumf %23, %24 : vector<2x8xf32>
      %c0_25 = arith.constant 0 : index
      %c0_26 = arith.constant 0 : index
      %26 = vector.load %arg5[%c0_25, %c0_26] : memref<2x8xf32, #tpu.memory_space<vmem>>, vector<2x8xf32>
      tpu.vector_store %arg5[%c0_25, %c0_26], %25 {strides = array<i32>} : memref<2x8xf32, #tpu.memory_space<vmem>>, vector<2x8xf32>,
    } else {
    }
    return
  }
  func.func @transform_0(%arg0: i32) -> (i32, i32, i32) {
    %c0_i32 = arith.constant 0 : i32
    %c0_i32_0 = arith.constant 0 : i32
    %c0_i32_1 = arith.constant 0 : i32
    return %c0_i32, %c0_i32_0, %arg0 : i32, i32, i32
  }
  func.func @transform_1(%arg0: i32) -> (i32, i32) {
    %c0_i32 = arith.constant 0 : i32
    %c0_i32_0 = arith.constant 0 : i32
    %c0_i32_1 = arith.constant 0 : i32
    return %c0_i32, %c0_i32_0 : i32, i32
  }
  func.func @transform_2(%arg0: i32) -> (i32, i32) {
    %c0_i32 = arith.constant 0 : i32
    %c0_i32_0 = arith.constant 0 : i32
    %c0_i32_1 = arith.constant 0 : i32
    return %c0_i32, %c0_i32_0 : i32, i32
  }
  func.func @transform_3(%arg0: i32) -> (i32, i32) {
    %c0_i32 = arith.constant 0 : i32
    %c0_i32_0 = arith.constant 0 : i32
    %c0_i32_1 = arith.constant 0 : i32
    return %c0_i32, %c0_i32_0 : i32, i32
  }
  func.func @transform_4(%arg0: i32) -> (i32, i32) {
    %c0_i32 = arith.constant 0 : i32
    %c0_i32_0 = arith.constant 0 : i32
    %c0_i32_1 = arith.constant 0 : i32
    return %c0_i32, %c0_i32_0 : i32, i32
  }
}

</mosaic_0001>

<bundles_post_ra>
// kernel: tpu_custom_call.1
= control target key start
LH: loop header
LB: loop body
LE: loop exit
PB: predicated region body
PF: predicated region fallthrough
CT: control target
= control target key end

     0   :  { %9 = vsyncpa [#allocation4], 0  ;;  %s280_s0 = inlined_call_operand.hbm [shape: f32[2,4,256], index: 0, kind: input, shape index: {}]   ;;  %s281_s1 = inlined_call_operand.hbm [shape: f32[4,8], index: 1, kind: input, shape index: {}]   ;;  %s282_s2 = inlined_call_operand.vmem [shape: f32[1,8], index: 2, kind: input, shape index: {}]   ;;  %s283_s3 = inlined_call_operand.vmem [shape: f32[1,8], index: 3, kind: input, shape index: {}]   ;;  %s284_s4 = inlined_call_operand.hbm [shape: f32[2,8], index: 4, kind: output, shape index: {}]  }
   0x1   :  { %10 = vsyncpa [#allocation7], 0 }
   0x2   :  { %11 = vsyncpa [#allocation5], 0  ;;  %s16_s17 = sshll.u32 %s280_s0, 4  ;;  %s234_s18 = smov [#allocation3]   ;;  %s17_s17 = int_to_ptr.hbm [resolvable:$true] %s16_s17 }
   0x3   :  { %s18_s19 = sshll.u32 %s234_s18, 4  ;;  %s30_s22 = sshll.u32 %s281_s1, 4  ;;  %s19_s19 = int_to_ptr.vmem [resolvable:$true] %s18_s19  ;;  %s31_s22 = int_to_ptr.hbm [resolvable:$true] %s30_s22 }
   0x4   :  { %s235_s23 = smov 128   ;;  %s236_s24 = smov 8  }
   0x5   :  { %24 = dma.hbm_to_vmem [thread:$0]  %s17_s17, 256, %s19_s19, [#allocation4], %s235_s23, %s235_s23, %s236_s24  }
   0x6   :  { %s237_s25 = smov [#allocation6]  }
   0x7   :  { %s32_s26 = sshll.u32 %s237_s25, 4  ;;  %s33_s26 = int_to_ptr.vmem [resolvable:$true] %s32_s26 }
   0x8   :  { %35 = dma.hbm_to_vmem [thread:$0]  %s31_s22, 64, %s33_s26, [#allocation7]  }
   0x9   :  { %228 = dma.done.wait [#allocation4], 256  }
   0xa   :  { %229 = vsyncadd [#allocation4], 4294967040 }
   0xb   :  { %230 = dma.done.wait [#allocation7], 64  }
   0xc   :  { %231 = vsyncadd [#allocation7], 4294967232  ;;  %v238_v0 = vmov 0.0   ;;  %v56_v1 = vld [vmem:[#allocation3] sm:$0xf]  ;;  %vm71_vm0 = vcmask 1043456   ;;  %v83_v17 = vlaneseq }
   0xd   :  { %52 = vst [vmem:[#allocation2] sm:$0xf] %v238_v0  ;;  %v57_v2 = vld [vmem:[#allocation3 + $0x8] sm:$0xf]  ;;  %v60_v4 = vld [vmem:[#allocation3 + $0x4] sm:$0xf] }
   0xe   :  { %53 = vst [vmem:[#allocation2 + $0x4] sm:$0xf] %v238_v0  ;;  %v61_v7 = vld [vmem:[#allocation3 + $0xc] sm:$0xf]  ;;  %v80_v15 = vld [vmem:[#allocation6] sm:$0xf] }
   0xf   :  { %146 = vmatpush.msk.msra.mxu0 %vm71_vm0, %v80_v15  ;;  %v84_v18 = vand.u32 127, %v83_v17  ;;  %vm87_vm1 = vcmask 1041409   ;;  %vm89_vm2 = vcmask 31744   ;;  %v154_v25 = vld [vmem:[%s282_s2] ss:$0 sm:$0xff]  ;;  %s239_s29 = smov [#allocation8]  }
  0x10   :  { %v155_v26 = vld [vmem:[%s283_s3] ss:$0 sm:$0xff]  ;;  %s133_s30 = sshll.u32 %s239_s29, 4  ;;  %s135_s7 = sshll.u32 %s284_s4, 4  ;;  %vm126_vm3 = vcmask 58368   ;;  %s134_s30 = int_to_ptr.vmem [resolvable:$true] %s133_s30  ;;  %s136_s7 = int_to_ptr.hbm [resolvable:$true] %s135_s7 }
  0x14   :  { %v54_v3 = vld [vmem:[#allocation2] sm:$0xf] }
  0x15   :  { %v58_v5 = vadd.f32 %v56_v1, %v54_v3  ;;  %v55_v6 = vld [vmem:[#allocation2 + $0x4] sm:$0xf] }
  0x16   :  { %v59_v8 = vadd.f32 %v57_v2, %v55_v6 }
  0x17   :  { %v62_v9 = vadd.f32 %v60_v4, %v58_v5 }
  0x18   :  { %v63_v10 = vadd.f32 %v61_v7, %v59_v8 }
  0x19   :  { %64 = vst [vmem:[#allocation2] sm:$0xf] %v62_v9 }
  0x1a   :  { %65 = vst [vmem:[#allocation2 + $0x4] sm:$0xf] %v63_v10 }
  0x20   :  { %v69_v11 = vld [vmem:[#allocation2] sm:$0xf] }
  0x21   :  { %v72_v12 = vsel %vm71_vm0, %v69_v11, 0.0  ;;  %v70_v13 = vld [vmem:[#allocation2 + $0x4] sm:$0xf] }
  0x22   :  { %73 = vadd.xlane.f32.xlu0 %v72_v12  ;;  %v75_v14 = vsel %vm71_vm0, %v70_v13, 0.0 }
  0x2a   :  { %76 = vadd.xlane.f32.xlu0 %v75_v14 }
  0x95   :  { %v74_v16 = vpop.xlane.xlu0 %73 }
  0x96   :  { %v78_v19 = vmul.f32 0.00390625, %v74_v16 }
  0x98   :  { %v85_v22 = vperm.slane %v78_v19, %v84_v18 }
  0x9d   :  { %v77_v20 = vpop.xlane.xlu0 %76 }
  0x9e   :  { %v79_v21 = vmul.f32 0.00390625, %v77_v20 }
  0xa0   :  { %v86_v23 = vperm.slane %v79_v21, %v84_v18 }
  0xa2   :  { %v88_v24 = vsel %vm87_vm1, %v86_v23, %v85_v22 }
  0xa3   :  { %147 = vmatmul.msk.f32.vlgmr.msra.gmra.mxu0 %vm89_vm2, %v88_v24 }
 0x120   :  { %v112_v27 = vpop.f32.mrf.mxu0 }
 0x121   :  { %v119_v28 = vmul.f32 %v154_v25, %v112_v27 }
 0x123   :  { %v124_v29 = vadd.f32 %v155_v26, %v119_v28 }
 0x125   :  { %v125_v30 = vmax.f32 %v124_v29, 0.0 }
 0x127   :  { %127 = vst.msk [vmem:[#allocation8] sm:$0x3] %vm126_vm3, %v125_v30 }
 0x128   :  { %138 = dma.vmem_to_hbm [thread:$0]  %s134_s30, 32, %s136_s7, [#allocation5]  }
 0x129   :  { %232 = dma.done.wait [#allocation5], 32  }
 0x12a   :  { %233 = vsyncadd [#allocation5], 4294967264 }
 0x12b   :  { %143 = vsyncpa [#allocation4], 1 }
 0x12c   :  { %144 = vsyncpa [#allocation7], 1 }
 0x12d   :  { %145 = vsyncpa [#allocation5], 1 }

</bundles_post_ra>
